<compile_context>
chip_gen: v5e
topology: v5e:2x2
jax: 0.10.0
libtpu: 0.0.40
codegen_flags: <defaults>
</compile_context>

<pallas_src>
import functools
import numpy as np

import jax
import jax.numpy as jnp
from jax import lax
from jax.experimental import pallas as pl
from jax.experimental.pallas import tpu as pltpu


# --------------------------------------------------------------------------
# Interpolation tables (numpy, built once per shape and cached).
# Matches F.interpolate(mode='bilinear', align_corners=True) + center crop.
# --------------------------------------------------------------------------
def _bilinear_taps(in_size, out_size, crop_off, crop_len):
    """Per cropped output index: 2 source indices (int32) + 2 weights (f32)."""
    if out_size == 1:
        src = np.zeros((out_size,), np.float64)
    else:
        src = np.arange(out_size, dtype=np.float64) * (in_size - 1) / (out_size - 1)
    src = src[crop_off:crop_off + crop_len]
    i0 = np.clip(np.floor(src), 0, in_size - 1).astype(np.int32)
    i1 = np.minimum(i0 + 1, in_size - 1).astype(np.int32)
    w1 = (src - i0).astype(np.float32)
    w0 = (np.float32(1.0) - w1).astype(np.float32)
    idx = np.stack([i0, i1], axis=1)          # (crop_len, 2) int32
    wts = np.stack([w0, w1], axis=1)          # (crop_len, 2) float32
    return idx, wts


def _taps_to_dense(idx, wts, in_size):
    """Dense (crop_len, in_size) interpolation matrix from the 2-tap tables."""
    n = idx.shape[0]
    m = np.zeros((n, in_size), np.float32)
    m[np.arange(n), idx[:, 0]] += wts[:, 0]
    m[np.arange(n), idx[:, 1]] += wts[:, 1]
    return m


def _pick_row_tile(th, cap=64):
    """Largest divisor of th <= min(cap, th//2) (>=2 tiles when reasonable)."""
    if th <= 8:
        return th
    limit = max(8, min(cap, th // 2))
    for tr in range(limit, 0, -1):
        if th % tr == 0:
            return tr
    return th


# --------------------------------------------------------------------------
# Fused kernel: bilinear upsample + crop + 3x3 'same' conv, per (sample, row
# tile).  Channels-last so C sits on the lane axis.
# --------------------------------------------------------------------------
def _upsample_conv_kernel(rows_i_ref,   # SMEM (2*th,)       int32 (scalar prefetch)
                          rows_w_ref,   # SMEM (2*th,)       f32   blend weights
                          x_ref,        # VMEM (H, W, C)     f32   NHWC sample
                          aw_ref,       # VMEM (tw+2, W)     f32   width interp (zero halo rows)
                          w3_ref,       # VMEM (3, 3C, Cout) bf16  conv taps packed over dx
                          b_ref,        # VMEM (1, Cout)     f32   conv bias
                          o_ref,        # VMEM (TR, tw, Cout) f32  output row tile
                          up_ref):      # VMEM scratch (TR+2, tw+2, C) bf16
    H, W, C = x_ref.shape
    TR, tw, cout = o_ref.shape
    th = rows_i_ref.shape[0] // 2
    r = pl.program_id(1)

    aw = aw_ref[...]                                     # (tw+2, W), loop-invariant

    # ---- stage 1: bilinear upsample (+crop) into the haloed bf16 scratch.
    # Scratch row s holds global upsampled row g = r*TR + s - 1.  Rows outside
    # [0, th) are the conv's zero padding: mask the blend weights (branchless),
    # so the whole stored row (incl. the left/right halo from aw's zero rows)
    # is zero.  Every store is one contiguous lane-dense (tw+2, C) slab.
    def interp_row(s, carry):
        g = r * TR + s - 1
        valid = jnp.logical_and(g >= 0, g < th).astype(jnp.float32)
        gc = jnp.clip(g, 0, th - 1)
        i0 = rows_i_ref[gc]
        i1 = rows_i_ref[gc + th]
        w0 = rows_w_ref[gc] * valid                      # scalar from SMEM
        w1 = rows_w_ref[gc + th] * valid
        xrow = x_ref[i0, :, :] * w0 + x_ref[i1, :, :] * w1          # (W, C) f32, VPU
        up_ref[s, :, :] = jnp.dot(
            aw, xrow, preferred_element_type=jnp.float32).astype(up_ref.dtype)
        return carry

    lax.fori_loop(0, TR + 2, interp_row, 0)

    # ---- stage 2: 3x3 'same' conv.  Per output row: pack the three
    # dx-shifted slices along channels (K = 3*C) and accumulate 3 MXU matmuls
    # (one per dy), bf16 operands with f32 accumulation.  Accumulator is
    # initialised by the first matmul (no zero fill).
    bias = b_ref[...]                                    # (1, Cout), hoisted

    def conv_row(t, carry):
        def lhs(dy):                                     # (tw, 3C) bf16
            return jnp.concatenate(
                [up_ref[t + dy, 0:tw, :],
                 up_ref[t + dy, 1:1 + tw, :],
                 up_ref[t + dy, 2:2 + tw, :]], axis=-1)

        acc = jnp.dot(lhs(0), w3_ref[0, :, :], preferred_element_type=jnp.float32)
        acc = acc + jnp.dot(lhs(1), w3_ref[1, :, :], preferred_element_type=jnp.float32)
        acc = acc + jnp.dot(lhs(2), w3_ref[2, :, :], preferred_element_type=jnp.float32)
        o_ref[t, :, :] = (acc + bias).astype(o_ref.dtype)
        return carry

    lax.fori_loop(0, TR, conv_row, 0)


@functools.partial(jax.jit, static_argnames=("tr",))
def _upsample_conv(x_nchw, rows_i, rows_w, aw_pad, w3, b2, *, tr):
    n, c, h, w = x_nchw.shape
    th = rows_w.shape[0] // 2
    tw = aw_pad.shape[0] - 2
    cout = w3.shape[-1]
    n_tiles = th // tr

    # TODO(synk): keep the surrounding FPN channels-last to remove these two
    # full-tensor HBM transposes.
    x_nhwc = jnp.transpose(x_nchw, (0, 2, 3, 1))         # (N, H, W, C)

    # VMEM budget: double-buffered inputs/outputs + persistent bf16 scratch.
    vmem_needed = (2 * (h * w * c * 4                    # x sample (f32)
                        + tr * tw * cout * 4             # output row tile (f32)
                        + (tw + 2) * w * 4               # width-interp matrix
                        + 9 * c * cout * 2               # conv taps (bf16)
                        + cout * 4)                      # bias
                   + (tr + 2) * (tw + 2) * c * 2)        # bf16 scratch
    vmem_limit = int(min(max(int(vmem_needed * 1.5) + (2 << 20), 32 << 20),
                         128 << 20))

    flops = 2 * n * th * ((tw + 2) * w * c + 9 * tw * c * cout)
    bytes_accessed = (n * h * w * c * 4 + n * th * tw * cout * 4
                      + 9 * c * cout * 2 + (tw + 2) * w * 4 + 4 * th * 4)

    grid_spec = pltpu.PrefetchScalarGridSpec(
        num_scalar_prefetch=1,                           # rows_i -> SMEM
        grid=(n, n_tiles),
        in_specs=[
            pl.BlockSpec(memory_space=pltpu.MemorySpace.SMEM),             # rows_w
            pl.BlockSpec((None, h, w, c), lambda i, r, ri: (i, 0, 0, 0)),  # x (NHWC), resident across r
            pl.BlockSpec((tw + 2, w), lambda i, r, ri: (0, 0)),            # aw_pad
            pl.BlockSpec((3, 3 * c, cout), lambda i, r, ri: (0, 0, 0)),    # conv taps
            pl.BlockSpec((1, cout), lambda i, r, ri: (0, 0)),              # bias
        ],
        out_specs=pl.BlockSpec((None, tr, tw, cout), lambda i, r, ri: (i, r, 0, 0)),
        scratch_shapes=[pltpu.VMEM((tr + 2, tw + 2, c), jnp.bfloat16)],
    )

    out_nhwc = pl.pallas_call(
        _upsample_conv_kernel,
        out_shape=jax.ShapeDtypeStruct((n, th, tw, cout), jnp.float32),
        grid_spec=grid_spec,
        compiler_params=pltpu.CompilerParams(
            dimension_semantics=("parallel", "parallel"),
            vmem_limit_bytes=vmem_limit),
        cost_estimate=pl.CostEstimate(
            flops=int(flops), transcendentals=0,
            bytes_accessed=int(bytes_accessed)),
    )(rows_i, rows_w, x_nhwc, aw_pad, w3, b2)

    return jnp.transpose(out_nhwc, (0, 3, 1, 2))         # back to NCHW


# --------------------------------------------------------------------------
# Module wrapper (mirrors the PyTorch Upsample module, forward only)
# --------------------------------------------------------------------------
class Upsample:
    def __init__(self, scale_factor, num_channels=128, key=None):
        if key is None:
            key = jax.random.PRNGKey(0)
        self.scale_factor = scale_factor
        self.num_channels = num_channels
        k1, k2 = jax.random.split(key)
        # PyTorch Conv2d default init: U(-1/sqrt(fan_in), 1/sqrt(fan_in))
        fan_in = num_channels * 3 * 3
        bound = 1.0 / (fan_in ** 0.5)
        self.w_oihw = jax.random.uniform(
            k1, (num_channels, num_channels, 3, 3), jnp.float32, -bound, bound)
        self.b = jax.random.uniform(
            k2, (num_channels,), jnp.float32, -bound, bound)
        # repack once for the kernel: (O, I, ky, kx) -> (ky, kx*I, O) in bf16
        # (K = 3*Cin packing; f32 accumulation happens on the MXU).
        self.w3 = jnp.transpose(self.w_oihw, (2, 3, 1, 0)).reshape(
            3, 3 * num_channels, num_channels).astype(jnp.bfloat16)
        self.b2 = self.b.reshape(1, num_channels)
        self._tables = {}        # interpolation tables, cached per (h, w, th, tw)

    def _get_tables(self, h, w, th, tw):
        cache_key = (h, w, th, tw)
        if cache_key not in self._tables:
            out_h = int(h * self.scale_factor)
            out_w = int(w * self.scale_factor)
            dif_h = (out_h - th) // 2
            dif_w = (out_w - tw) // 2
            h_idx, h_wts = _bilinear_taps(h, out_h, dif_h, th)
            w_idx, w_wts = _bilinear_taps(w, out_w, dif_w, tw)
            rows_i = jnp.asarray(
                np.concatenate([h_idx[:, 0], h_idx[:, 1]]).astype(np.int32))   # (2*th,)
            rows_w = jnp.asarray(
                np.concatenate([h_wts[:, 0], h_wts[:, 1]]).astype(np.float32)) # (2*th,)
            aw = _taps_to_dense(w_idx, w_wts, w)                               # (tw, W)
            aw_pad = np.zeros((tw + 2, w), np.float32)   # zero first/last rows = halo cols
            aw_pad[1:tw + 1, :] = aw
            self._tables[cache_key] = (rows_i, rows_w, jnp.asarray(aw_pad),
                                       _pick_row_tile(th))
        return self._tables[cache_key]

    def __call__(self, x_nchw, target_size):
        n, c, h, w = x_nchw.shape
        th, tw = int(target_size[2]), int(target_size[3])
        rows_i, rows_w, aw_pad, tr = self._get_tables(h, w, th, tw)
        return _upsample_conv(x_nchw, rows_i, rows_w, aw_pad, self.w3, self.b2,
                              tr=tr)


# --------------------------------------------------------------------------
# Pure-JAX reference (same math, XLA ops, full f32) for a sanity check
# --------------------------------------------------------------------------
def _reference(x_nchw, a_h, a_w, w_oihw, bias):
    up = jnp.einsum('th,nchw,vw->nctv', a_h, x_nchw, a_w,
                    precision=lax.Precision.HIGHEST)
    out = lax.conv_general_dilated(
        up, w_oihw, window_strides=(1, 1), padding='SAME',
        dimension_numbers=('NCHW', 'OIHW', 'NCHW'),
        precision=lax.Precision.HIGHEST)
    return out + bias[None, :, None, None]


if __name__ == "__main__":
    key = jax.random.PRNGKey(0)
    kx, kp = jax.random.split(key)

    N, C, H, W = 2, 4, 16, 16
    scale = 2
    target_size = (N, C, 24, 24)      # forward only uses target_size[2:]

    x = jax.random.normal(kx, (N, C, H, W), jnp.float32)
    mod = Upsample(scale, num_channels=C, key=kp)

    out = jax.block_until_ready(mod(x, target_size))
    assert out.shape == (N, C, 24, 24), out.shape

    # sanity check against a pure-JAX f32 reference built from the same tables
    # (kernel uses bf16 conv operands with f32 accumulation -> wider tolerance)
    out_h, out_w = H * scale, W * scale
    th, tw = target_size[2], target_size[3]
    dif_h = (out_h - th) // 2
    dif_w = (out_w - tw) // 2
    h_idx, h_wts = _bilinear_taps(H, out_h, dif_h, th)
    w_idx, w_wts = _bilinear_taps(W, out_w, dif_w, tw)
    a_h = jnp.asarray(_taps_to_dense(h_idx, h_wts, H))
    a_w = jnp.asarray(_taps_to_dense(w_idx, w_wts, W))
    ref = _reference(x, a_h, a_w, mod.w_oihw, mod.b)
    err = float(jnp.max(jnp.abs(out - ref)))
    assert jnp.allclose(out, ref, atol=5e-2, rtol=5e-2), err

    print("KERNEL_OK")
</pallas_src>

<mosaic_0001>
module attributes {stable_mosaic.version = 11 : i64} {
  func.func @_upsample_conv_kernel(%arg0: i32, %arg1: i32, %arg2: memref<48xi32, #tpu.memory_space<smem>>, %arg3: memref<48xf32, #tpu.memory_space<smem>>, %arg4: memref<1x16x16x4xf32, #tpu.memory_space<vmem>>, %arg5: memref<26x16xf32, #tpu.memory_space<vmem>>, %arg6: memref<3x12x4xbf16, #tpu.memory_space<vmem>>, %arg7: memref<1x4xf32, #tpu.memory_space<vmem>>, %arg8: memref<1x12x24x4xf32, #tpu.memory_space<vmem>>, %arg9: memref<14x26x4xbf16, #tpu.memory_space<vmem>>) attributes {dimension_semantics = [#tpu.dimension_semantics<parallel>, #tpu.dimension_semantics<parallel>], iteration_bounds = array<i64: 2, 2>, scalar_prefetch = 1 : i64, scratch_operands = 1 : i64, tpu.core_type = #tpu.core_type<tc>, window_params = [{transform_indices = @transform_0, window_bounds = array<i64: 48>}, {transform_indices = @transform_1, window_bounds = array<i64: 1, 16, 16, 4>}, {pipeline_mode = #tpu.pipeline_mode<synchronous>, transform_indices = @transform_2, window_bounds = array<i64: 26, 16>}, {pipeline_mode = #tpu.pipeline_mode<synchronous>, transform_indices = @transform_3, window_bounds = array<i64: 3, 12, 4>}, {pipeline_mode = #tpu.pipeline_mode<synchronous>, transform_indices = @transform_4, window_bounds = array<i64: 1, 4>}, {transform_indices = @transform_5, window_bounds = array<i64: 1, 12, 24, 4>}]} {
    %c0 = arith.constant 0 : index
    %c0_0 = arith.constant 0 : index
    %0 = vector.load %arg5[%c0, %c0_0] : memref<26x16xf32, #tpu.memory_space<vmem>>, vector<26x16xf32>
    %c0_i32 = arith.constant 0 : i32
    %c14_i32 = arith.constant 14 : i32
    %1 = arith.addi %c0_i32, %c14_i32 : i32
    %c1_i32 = arith.constant 1 : i32
    scf.for %arg10 = %c0_i32 to %1 step %c1_i32  : i32 {
      %c12_i32_7 = arith.constant 12 : i32
      %4 = arith.muli %arg1, %c12_i32_7 : i32
      %5 = arith.addi %4, %arg10 : i32
      %c1_i32_8 = arith.constant 1 : i32
      %6 = arith.subi %5, %c1_i32_8 : i32
      %c0_i32_9 = arith.constant 0 : i32
      %7 = arith.cmpi sge, %6, %c0_i32_9 : i32
      %c24_i32 = arith.constant 24 : i32
      %8 = arith.cmpi slt, %6, %c24_i32 : i32
      %9 = arith.andi %7, %8 : i1
      %10 = arith.extui %9 : i1 to i32
      %11 = arith.sitofp %10 : i32 to f32
      %c0_i32_10 = arith.constant 0 : i32
      %c23_i32 = arith.constant 23 : i32
      %12 = arith.maxsi %c0_i32_10, %6 : i32
      %13 = arith.minsi %c23_i32, %12 : i32
      %14 = arith.index_cast %13 : i32 to index
      %15 = memref.load %arg2[%14] : memref<48xi32, #tpu.memory_space<smem>>
      %c24_i32_11 = arith.constant 24 : i32
      %16 = arith.addi %13, %c24_i32_11 : i32
      %17 = arith.index_cast %16 : i32 to index
      %18 = memref.load %arg2[%17] : memref<48xi32, #tpu.memory_space<smem>>
      %19 = arith.index_cast %13 : i32 to index
      %20 = memref.load %arg3[%19] : memref<48xf32, #tpu.memory_space<smem>>
      %21 = arith.mulf %20, %11 : f32
      %c24_i32_12 = arith.constant 24 : i32
      %22 = arith.addi %13, %c24_i32_12 : i32
      %23 = arith.index_cast %22 : i32 to index
      %24 = memref.load %arg3[%23] : memref<48xf32, #tpu.memory_space<smem>>
      %25 = arith.mulf %24, %11 : f32
      %c0_13 = arith.constant 0 : index
      %26 = arith.index_cast %15 : i32 to index
      %c0_14 = arith.constant 0 : index
      %c0_15 = arith.constant 0 : index
      %27 = vector.load %arg4[%c0_13, %26, %c0_14, %c0_15] : memref<1x16x16x4xf32, #tpu.memory_space<vmem>>, vector<1x1x16x4xf32>
      %28 = vector.shape_cast %27 : vector<1x1x16x4xf32> to vector<16x4xf32>
      %29 = vector.broadcast %21 : f32 to vector<16x4xf32>
      %30 = arith.mulf %28, %29 : vector<16x4xf32>
      %c0_16 = arith.constant 0 : index
      %31 = arith.index_cast %18 : i32 to index
      %c0_17 = arith.constant 0 : index
      %c0_18 = arith.constant 0 : index
      %32 = vector.load %arg4[%c0_16, %31, %c0_17, %c0_18] : memref<1x16x16x4xf32, #tpu.memory_space<vmem>>, vector<1x1x16x4xf32>
      %33 = vector.shape_cast %32 : vector<1x1x16x4xf32> to vector<16x4xf32>
      %34 = vector.broadcast %25 : f32 to vector<16x4xf32>
      %35 = arith.mulf %33, %34 : vector<16x4xf32>
      %36 = arith.addf %30, %35 : vector<16x4xf32>
      %cst = arith.constant dense<0.000000e+00> : vector<26x4xf32>
      %37 = tpu.matmul %0, %36, %cst {dimension_numbers = #tpu.dot_dimension_numbers<[1], [0], [0], [1], [0, 0, 1, 1], [], []>} : vector<26x16xf32>, vector<16x4xf32>, vector<26x4xf32> -> vector<26x4xf32>
      %38 = arith.truncf %37 : vector<26x4xf32> to vector<26x4xbf16>
      %39 = arith.index_cast %arg10 : i32 to index
      %c0_19 = arith.constant 0 : index
      %c0_20 = arith.constant 0 : index
      %40 = vector.load %arg9[%39, %c0_19, %c0_20] : memref<14x26x4xbf16, #tpu.memory_space<vmem>>, vector<1x26x4xbf16>
      %41 = vector.shape_cast %40 : vector<1x26x4xbf16> to vector<26x4xbf16>
      %42 = vector.shape_cast %38 : vector<26x4xbf16> to vector<1x26x4xbf16>
      tpu.vector_store %arg9[%39, %c0_19, %c0_20], %42 {strides = array<i32>} : memref<14x26x4xbf16, #tpu.memory_space<vmem>>, vector<1x26x4xbf16>,
    }
    %c14_i32_1 = arith.constant 14 : i32
    %c0_2 = arith.constant 0 : index
    %c0_3 = arith.constant 0 : index
    %2 = vector.load %arg7[%c0_2, %c0_3] : memref<1x4xf32, #tpu.memory_space<vmem>>, vector<1x4xf32>
    %c0_i32_4 = arith.constant 0 : i32
    %c12_i32 = arith.constant 12 : i32
    %3 = arith.addi %c0_i32_4, %c12_i32 : i32
    %c1_i32_5 = arith.constant 1 : i32
    scf.for %arg10 = %c0_i32_4 to %3 step %c1_i32_5  : i32 {
      %c0_i32_7 = arith.constant 0 : i32
      %4 = arith.addi %arg10, %c0_i32_7 : i32
      %5 = arith.index_cast %4 : i32 to index
      %c0_8 = arith.constant 0 : index
      %c0_9 = arith.constant 0 : index
      %6 = vector.load %arg9[%5, %c0_8, %c0_9] : memref<14x26x4xbf16, #tpu.memory_space<vmem>>, vector<1x24x4xbf16>
      %7 = vector.shape_cast %6 : vector<1x24x4xbf16> to vector<24x4xbf16>
      %c0_i32_10 = arith.constant 0 : i32
      %8 = arith.addi %arg10, %c0_i32_10 : i32
      %9 = arith.index_cast %8 : i32 to index
      %c1 = arith.constant 1 : index
      %c0_11 = arith.constant 0 : index
      %10 = vector.load %arg9[%9, %c1, %c0_11] : memref<14x26x4xbf16, #tpu.memory_space<vmem>>, vector<1x24x4xbf16>
      %11 = vector.shape_cast %10 : vector<1x24x4xbf16> to vector<24x4xbf16>
      %c0_i32_12 = arith.constant 0 : i32
      %12 = arith.addi %arg10, %c0_i32_12 : i32
      %13 = arith.index_cast %12 : i32 to index
      %c2 = arith.constant 2 : index
      %c0_13 = arith.constant 0 : index
      %14 = vector.load %arg9[%13, %c2, %c0_13] : memref<14x26x4xbf16, #tpu.memory_space<vmem>>, vector<1x24x4xbf16>
      %15 = vector.shape_cast %14 : vector<1x24x4xbf16> to vector<24x4xbf16>
      %16 = tpu.concatenate %7, %11, %15 in 1 : vector<24x4xbf16>, vector<24x4xbf16>, vector<24x4xbf16> -> vector<24x12xbf16>
      %c0_14 = arith.constant 0 : index
      %c0_15 = arith.constant 0 : index
      %c0_16 = arith.constant 0 : index
      %17 = vector.load %arg6[%c0_14, %c0_15, %c0_16] : memref<3x12x4xbf16, #tpu.memory_space<vmem>>, vector<1x12x4xbf16>
      %18 = vector.shape_cast %17 : vector<1x12x4xbf16> to vector<12x4xbf16>
      %cst = arith.constant dense<0.000000e+00> : vector<24x4xf32>
      %19 = tpu.matmul %16, %18, %cst {dimension_numbers = #tpu.dot_dimension_numbers<[1], [0], [0], [1], [0, 0, 1, 1], [], []>} : vector<24x12xbf16>, vector<12x4xbf16>, vector<24x4xf32> -> vector<24x4xf32>
      %c1_i32_17 = arith.constant 1 : i32
      %20 = arith.addi %arg10, %c1_i32_17 : i32
      %21 = arith.index_cast %20 : i32 to index
      %c0_18 = arith.constant 0 : index
      %c0_19 = arith.constant 0 : index
      %22 = vector.load %arg9[%21, %c0_18, %c0_19] : memref<14x26x4xbf16, #tpu.memory_space<vmem>>, vector<1x24x4xbf16>
      %23 = vector.shape_cast %22 : vector<1x24x4xbf16> to vector<24x4xbf16>
      %c1_i32_20 = arith.constant 1 : i32
      %24 = arith.addi %arg10, %c1_i32_20 : i32
      %25 = arith.index_cast %24 : i32 to index
      %c1_21 = arith.constant 1 : index
      %c0_22 = arith.constant 0 : index
      %26 = vector.load %arg9[%25, %c1_21, %c0_22] : memref<14x26x4xbf16, #tpu.memory_space<vmem>>, vector<1x24x4xbf16>
      %27 = vector.shape_cast %26 : vector<1x24x4xbf16> to vector<24x4xbf16>
      %c1_i32_23 = arith.constant 1 : i32
      %28 = arith.addi %arg10, %c1_i32_23 : i32
      %29 = arith.index_cast %28 : i32 to index
      %c2_24 = arith.constant 2 : index
      %c0_25 = arith.constant 0 : index
      %30 = vector.load %arg9[%29, %c2_24, %c0_25] : memref<14x26x4xbf16, #tpu.memory_space<vmem>>, vector<1x24x4xbf16>
      %31 = vector.shape_cast %30 : vector<1x24x4xbf16> to vector<24x4xbf16>
      %32 = tpu.concatenate %23, %27, %31 in 1 : vector<24x4xbf16>, vector<24x4xbf16>, vector<24x4xbf16> -> vector<24x12xbf16>
      %c1_26 = arith.constant 1 : index
      %c0_27 = arith.constant 0 : index
      %c0_28 = arith.constant 0 : index
      %33 = vector.load %arg6[%c1_26, %c0_27, %c0_28] : memref<3x12x4xbf16, #tpu.memory_space<vmem>>, vector<1x12x4xbf16>
      %34 = vector.shape_cast %33 : vector<1x12x4xbf16> to vector<12x4xbf16>
      %cst_29 = arith.constant dense<0.000000e+00> : vector<24x4xf32>
      %35 = tpu.matmul %32, %34, %cst_29 {dimension_numbers = #tpu.dot_dimension_numbers<[1], [0], [0], [1], [0, 0, 1, 1], [], []>} : vector<24x12xbf16>, vector<12x4xbf16>, vector<24x4xf32> -> vector<24x4xf32>
      %36 = arith.addf %19, %35 : vector<24x4xf32>
      %c2_i32 = arith.constant 2 : i32
      %37 = arith.addi %arg10, %c2_i32 : i32
      %38 = arith.index_cast %37 : i32 to index
      %c0_30 = arith.constant 0 : index
      %c0_31 = arith.constant 0 : index
      %39 = vector.load %arg9[%38, %c0_30, %c0_31] : memref<14x26x4xbf16, #tpu.memory_space<vmem>>, vector<1x24x4xbf16>
      %40 = vector.shape_cast %39 : vector<1x24x4xbf16> to vector<24x4xbf16>
      %c2_i32_32 = arith.constant 2 : i32
      %41 = arith.addi %arg10, %c2_i32_32 : i32
      %42 = arith.index_cast %41 : i32 to index
      %c1_33 = arith.constant 1 : index
      %c0_34 = arith.constant 0 : index
      %43 = vector.load %arg9[%42, %c1_33, %c0_34] : memref<14x26x4xbf16, #tpu.memory_space<vmem>>, vector<1x24x4xbf16>
      %44 = vector.shape_cast %43 : vector<1x24x4xbf16> to vector<24x4xbf16>
      %c2_i32_35 = arith.constant 2 : i32
      %45 = arith.addi %arg10, %c2_i32_35 : i32
      %46 = arith.index_cast %45 : i32 to index
      %c2_36 = arith.constant 2 : index
      %c0_37 = arith.constant 0 : index
      %47 = vector.load %arg9[%46, %c2_36, %c0_37] : memref<14x26x4xbf16, #tpu.memory_space<vmem>>, vector<1x24x4xbf16>
      %48 = vector.shape_cast %47 : vector<1x24x4xbf16> to vector<24x4xbf16>
      %49 = tpu.concatenate %40, %44, %48 in 1 : vector<24x4xbf16>, vector<24x4xbf16>, vector<24x4xbf16> -> vector<24x12xbf16>
      %c2_38 = arith.constant 2 : index
      %c0_39 = arith.constant 0 : index
      %c0_40 = arith.constant 0 : index
      %50 = vector.load %arg6[%c2_38, %c0_39, %c0_40] : memref<3x12x4xbf16, #tpu.memory_space<vmem>>, vector<1x12x4xbf16>
      %51 = vector.shape_cast %50 : vector<1x12x4xbf16> to vector<12x4xbf16>
      %cst_41 = arith.constant dense<0.000000e+00> : vector<24x4xf32>
      %52 = tpu.matmul %49, %51, %cst_41 {dimension_numbers = #tpu.dot_dimension_numbers<[1], [0], [0], [1], [0, 0, 1, 1], [], []>} : vector<24x12xbf16>, vector<12x4xbf16>, vector<24x4xf32> -> vector<24x4xf32>
      %53 = arith.addf %36, %52 : vector<24x4xf32>
      %54 = vector.broadcast %2 : vector<1x4xf32> to vector<24x4xf32>
      %55 = arith.addf %53, %54 : vector<24x4xf32>
      %c0_42 = arith.constant 0 : index
      %56 = arith.index_cast %arg10 : i32 to index
      %c0_43 = arith.constant 0 : index
      %c0_44 = arith.constant 0 : index
      %57 = vector.load %arg8[%c0_42, %56, %c0_43, %c0_44] : memref<1x12x24x4xf32, #tpu.memory_space<vmem>>, vector<1x1x24x4xf32>
      %58 = vector.shape_cast %57 : vector<1x1x24x4xf32> to vector<24x4xf32>
      %59 = vector.shape_cast %55 : vector<24x4xf32> to vector<1x1x24x4xf32>
      tpu.vector_store %arg8[%c0_42, %56, %c0_43, %c0_44], %59 {strides = array<i32>} : memref<1x12x24x4xf32, #tpu.memory_space<vmem>>, vector<1x1x24x4xf32>,
    }
    %c12_i32_6 = arith.constant 12 : i32
    return
  }
  func.func @transform_0(%arg0: i32, %arg1: i32, %arg2: memref<48xi32, #tpu.memory_space<smem>>) -> i32 {
    %c0_i32 = arith.constant 0 : i32
    %c0_i32_0 = arith.constant 0 : i32
    return %c0_i32 : i32
  }
  func.func @transform_1(%arg0: i32, %arg1: i32, %arg2: memref<48xi32, #tpu.memory_space<smem>>) -> (i32, i32, i32, i32) {
    %c0_i32 = arith.constant 0 : i32
    %c0_i32_0 = arith.constant 0 : i32
    %c0_i32_1 = arith.constant 0 : i32
    %c0_i32_2 = arith.constant 0 : i32
    return %arg0, %c0_i32, %c0_i32_0, %c0_i32_1 : i32, i32, i32, i32
  }
  func.func @transform_2(%arg0: i32, %arg1: i32, %arg2: memref<48xi32, #tpu.memory_space<smem>>) -> (i32, i32) {
    %c0_i32 = arith.constant 0 : i32
    %c0_i32_0 = arith.constant 0 : i32
    %c0_i32_1 = arith.constant 0 : i32
    return %c0_i32, %c0_i32_0 : i32, i32
  }
  func.func @transform_3(%arg0: i32, %arg1: i32, %arg2: memref<48xi32, #tpu.memory_space<smem>>) -> (i32, i32, i32) {
    %c0_i32 = arith.constant 0 : i32
    %c0_i32_0 = arith.constant 0 : i32
    %c0_i32_1 = arith.constant 0 : i32
    %c0_i32_2 = arith.constant 0 : i32
    return %c0_i32, %c0_i32_0, %c0_i32_1 : i32, i32, i32
  }
  func.func @transform_4(%arg0: i32, %arg1: i32, %arg2: memref<48xi32, #tpu.memory_space<smem>>) -> (i32, i32) {
    %c0_i32 = arith.constant 0 : i32
    %c0_i32_0 = arith.constant 0 : i32
    %c0_i32_1 = arith.constant 0 : i32
    return %c0_i32, %c0_i32_0 : i32, i32
  }
  func.func @transform_5(%arg0: i32, %arg1: i32, %arg2: memref<48xi32, #tpu.memory_space<smem>>) -> (i32, i32, i32, i32) {
    %c0_i32 = arith.constant 0 : i32
    %c0_i32_0 = arith.constant 0 : i32
    %c0_i32_1 = arith.constant 0 : i32
    return %arg0, %arg1, %c0_i32, %c0_i32_0 : i32, i32, i32, i32
  }
}

</mosaic_0001>

<bundles_post_ra>
// kernel: _upsample_conv.1
= control target key start
LH: loop header
LB: loop body
LE: loop exit
PB: predicated region body
PF: predicated region fallthrough
CT: control target
= control target key end

     0   :  { %s1063_s24 = smov [#allocation4]   ;;  %s1329_s0 = inlined_call_operand.vmem [shape: s32[48], index: 0, kind: input, shape index: {}]   ;;  %s1330_s1 = inlined_call_operand.vmem [shape: f32[48], index: 1, kind: input, shape index: {}]   ;;  %s1331_s2 = inlined_call_operand.vmem [shape: f32[2,16,16,4], index: 2, kind: input, shape index: {}]   ;;  %s1332_s3 = inlined_call_operand.vmem [shape: f32[26,16], index: 3, kind: input, shape index: {}]   ;;  %s1333_s4 = inlined_call_operand.vmem [shape: bf16[3,12,4], index: 4, kind: input, shape index: {}]   ;;  %s1334_s5 = inlined_call_operand.vmem [shape: f32[1,4], index: 5, kind: input, shape index: {}]   ;;  %s1335_s6 = inlined_call_operand.vmem [shape: f32[2,24,24,4], index: 6, kind: output, shape index: {}]  }
   0x1   :  { %s12_s23 = sshll.u32 %s1329_s0, 4  ;;  %s13_s23 = int_to_ptr.vmem [resolvable:$true] %s12_s23 }
   0x2   :  { %15 = dma.vmem_to_smem %s13_s23, 16, %s1063_s24, [#allocation3] }
   0x3   :  { %1029 = dma.done.wait [#allocation3], 16 }
   0x4   :  { %1030 = vsyncadd [#allocation3], 4294967280 }
   0x5   :  { %18 = sfence }
   0x6   :  { %19 = vsyncpa [#allocation6], 0  ;;  %s1105_s25 = smov 0   ;;  %s1107_s26 = smov 0  }
   0x7   :  { %s1109_s27 = smov 0   ;;  %s1111_s28 = smov 0  }
   0x8   :  { %s1113_s29 = smov 0  }
   0x9 LB: > { %s801_s0 = sadd.s32 4294967295, %s1053_s29   ;;  %s34_s30 = sadd.s32 1, %s1045_s27  ;;  %s1053_s29 = sphi %s1113_s29, %s25_s29   ;;  %s1049_s28 = sphi %s1111_s28, %s1339_s28   ;;  %s1045_s27 = sphi %s1109_s27, %s1338_s27   ;;  %s1041_s26 = sphi %s1107_s26, %s1337_s26   ;;  %s1037_s25 = sphi %s1105_s25, %s1336_s25  }
   0xa   : > { %p35_p0 = scmp.ge.s32.totalorder %s34_s30, 2  ;;  %s37_s7 = sadd.s32 1, %s1049_s28 }
   0xb   : > { %p803_p1 = scmp.ge.s32.totalorder %s1053_s29, 1  ;;  %p180_p2 = scmp.lt.s32.totalorder %s1053_s29, 5 }
   0xc   : > { %s1341_s30 = smov (%p35_p0, %s34_s30), 0  ;;  %s1343_s7 = smov (!%p35_p0, %s37_s7), %s1049_s28 }
   0xd   : > { %p181_p3 = pnand %p803_p1, %p180_p2  ;;  %p39_p4 = scmp.ge.s32.totalorder %s1343_s7, 2 }
   0xe   : > { %p912_p5 = scmp.eq.s32.totalorder %s801_s0, 0  ;;  %s192_s10 = sshll.u32 %s1330_s1, 4  ;;  %s193_s10 = int_to_ptr.vmem [resolvable:$true] %s192_s10 }
   0xf   : > { %p908_p6 = pneg %p181_p3  ;;  %s1345_s7 = smov (%p39_p4, %s1343_s7), 0 }
  0x10   : > { %s1064_s11 = smov [#allocation5]   ;;  %222 = sbr.rel (%p181_p3) target bundleno = 496 (0x1f0), region = 40 }
  0x11   : > { %p909_p7 = pnand %p912_p5, %p908_p6 }
  0x13   : > { %911 = dma.vmem_to_smem (!%p909_p7), %s193_s10, 16, %s1064_s11, [#allocation6]  }
  0x15   : > { %1032 = dma.done.wait (%p912_p5), [#allocation6], 16  }
  0x16   : > { %1034 = vsyncadd (%p912_p5), [#allocation6], 4294967280 }
  0x17   : > { %229 = sfence }
  0x18   : > { %p257_p8 = scmp.lt.s32.totalorder %s1041_s26, 1  ;;  %s1142_s12 = smul.u32 12, %s1037_s25  ;;  %v1147_v0 = vld [vmem:[%s1332_s3] sm:$0xff]  ;;  %v1152_v1 = vld [vmem:[%s1332_s3 + $0x8] sm:$0xff]  ;;  %v1157_v2 = vld [vmem:[%s1332_s3 + $0x10] sm:$0xff] }
  0x19   : > { %v1162_v3 = vld [vmem:[%s1332_s3 + $0x18] sm:$0x3]  ;;  %s1177_s15 = smov 0  }
  0x1a   : > { %s1347_s26 = smov (!%p257_p8, %s1041_s26), 1  ;;  %p265_p9 = scmp.lt.s32.totalorder %s1142_s12, 23 }
  0x1b   : > { %s864_s21 = sshll.u32 %s1347_s26, 8  ;;  %s903_s25 = smul.u32 72, %s1347_s26 }
  0x1c   : > { %s1169_s24 = scalar_lea.vmem %s1331_s2, %s864_s21 }
  0x1d   : > { %s266_s0 = scalar_select %p265_p9, %s1142_s12, 23 }
  0x1f   : > { %s902_s8 = smul.u32 3, %s266_s0 }
  0x21   : > { %s269_s9 = sadd.s32 %s903_s25, %s902_s8 }
  0x22   : > { %s810_s10 = sshll.u32 %s269_s9, 3 }
  0x23   : > { %s1175_s14 = scalar_lea.vmem %s1335_s6, %s810_s10 }
  0x24 LB: >> { %s285_s16 = sadd.s32 %s1057_s15, %s1142_s12  ;;  %vm320_vm0 = vcmask 130048   ;;  %s867_s13 = sshll.u32 %s1057_s15, 4  ;;  %vm369_vm1 = vcmask 27648   ;;  %vm373_vm2 = vcmask 24576   ;;  %s1057_s15 = sphi %s1177_s15, %s283_s15  }
  0x25   : >> { %s811_s26 = sadd.s32 4294967295, %s285_s16  ;;  %s368_s16 = scalar_lea.vmem [#allocation2], %s867_s13 }
  0x26   : >> { %p287_p10 = scmp.ge.s32.totalorder %s811_s26, 0  ;;  %p288_p11 = scmp.lt.s32.totalorder %s811_s26, 24 }
  0x27   : >> { %p293_p12 = scmp.gt.s32.totalorder %s811_s26, 0  ;;  %p813_p13 = scmp.lt.s32.totalorder %s811_s26, 23 }
  0x28   : >> { %p289_p0 = pnand %p288_p11, %p287_p10  ;;  %s283_s15 = sadd.s32 1, %s1057_s15  }
  0x29   : >> { %s1349_s26 = smov (!%p293_p12, %s811_s26), 0  ;;  %p280_p1 = scmp.ge.s32.totalorder %s283_s15, 14  }
  0x2a   : >> { %s1351_s26 = smov (!%p813_p13, %s1349_s26), 23  ;;  %v1197_v24 = vld [vmem:[%s1334_s5] sm:$0x1] (%p280_p1) }
  0x2b   : >> { %s812_s17 = scalar_select %p289_p0, 0, 1 }
  0x2c   : >> { %s297_s18 = sld [smem:[#allocation4 + %s1351_s26]]  ;;  %s298_s19 = sadd.s32 24, %s1351_s26 }
  0x2d   : >> { %s299_s20 = sld [smem:[#allocation4 + %s298_s19]]  ;;  %s292_s23 = scvt.s32.f32 %s812_s17 }
  0x2e   : >> { %s300_s21 = sld [smem:[#allocation5 + %s1351_s26]] }
  0x2f   : >> { %s302_s22 = sld [smem:[#allocation5 + %s298_s19]] }
  0x32   : >> { %s818_s25 = sshll.u32 %s297_s18, 4  ;;  %s1199_s18 = smov (%p280_p1), 0  }
  0x33   : >> { %s305_s0 = scalar_lea.vmem %s1169_s24, %s818_s25  ;;  %s819_s8 = sshll.u32 %s299_s20, 4 }
  0x34   : >> { %s301_s9 = smul.f32 %s300_s21, %s292_s23  ;;  %v307_v4 = vld [vmem:[%s305_s0 + $0x8] sm:$0xff]  ;;  %s312_s10 = scalar_lea.vmem %s1169_s24, %s819_s8  ;;  %v306_v5 = vld [vmem:[%s305_s0] sm:$0xff] }
  0x35   : >> { %s303_s11 = smul.f32 %s302_s22, %s292_s23  ;;  %v314_v6 = vld [vmem:[%s312_s10 + $0x8] sm:$0xff]  ;;  %v313_v7 = vld [vmem:[%s312_s10] sm:$0xff] }
  0x36   : >> { %v308_v8 = vstv %s301_s9 }
  0x37   : >> { %v310_v9 = vmul.f32 %v308_v8, %v307_v4  ;;  %v315_v10 = vstv %s303_s11  ;;  %v309_v11 = vmul.f32 %v308_v8, %v306_v5 }
  0x38   : >> { %v317_v12 = vmul.f32 %v315_v10, %v314_v6  ;;  %v316_v13 = vmul.f32 %v315_v10, %v313_v7 }
  0x3a   : >> { %v319_v14 = vadd.f32 %v317_v12, %v310_v9  ;;  %v318_v15 = vadd.f32 %v316_v13, %v309_v11 }
  0x3c   : >> { %896 = vmatpush.msra.mxu2 %v319_v14  ;;  %897 = vmatpush.msra.mxu3 %v319_v14 }
  0x3d   : >> { %347 = vmatpush.msra.mxu0 %v319_v14  ;;  %895 = vmatpush.msra.mxu1 %v319_v14 }
  0x3e   : >> { %899 = vmatpush.msra.mxu2 %v318_v15  ;;  %900 = vmatpush.msra.mxu3 %v318_v15 }
  0x3f   : >> { %822 = vmatmul.msk.f32.vlgmr.msra.gmra.mxu2 %vm320_vm0, %v1157_v2  ;;  %823 = vmatmul.msk.f32.vlgmr.msra.gmra.mxu3 %vm320_vm0, %v1162_v3 }
  0x40   : >> { %348 = vmatpush.msra.mxu0 %v318_v15  ;;  %898 = vmatpush.msra.mxu1 %v318_v15 }
  0x41   : >> { %820 = vmatmul.msk.f32.vlgmr.msra.gmra.mxu0 %vm320_vm0, %v1147_v0  ;;  %821 = vmatmul.msk.f32.vlgmr.msra.gmra.mxu1 %vm320_vm0, %v1152_v1 }
  0xbe   : >> { %v350_v16 = vpop.f32.mrf.mxu0  ;;  %v353_v17 = vpop.f32.mrf.mxu1 }
  0xbf   : >> { %v362_v18 = vpack.c.bf16 %v350_v16, %v350_v16  ;;  %v363_v19 = vpack.c.bf16 %v353_v17, %v353_v17 }
  0xc1   : >> { %370 = vst.msk [vmem:[%s368_s16] sm:$0xf] %vm369_vm1, %v362_v18 }
  0xc2   : >> { %371 = vst.msk [vmem:[%s368_s16 + $0x4] sm:$0xf] %vm369_vm1, %v363_v19  ;;  %v356_v20 = vpop.f32.mrf.mxu2  ;;  %v359_v21 = vpop.f32.mrf.mxu3  ;;  %282 = sbr.rel (!%p280_p1) target bundleno = 36 (0x24), region = 98 }
  0xc3   : >> { %v364_v22 = vpack.c.bf16 %v356_v20, %v356_v20  ;;  %v365_v23 = vpack.c.bf16 %v359_v21, %v359_v21 }
  0xc5   : >> { %372 = vst.msk [vmem:[%s368_s16 + $0x8] sm:$0xf] %vm369_vm1, %v364_v22 }
  0xc6   : >> { %374 = vst.msk [vmem:[%s368_s16 + $0xc] sm:$0x1] %vm373_vm2, %v365_v23 }
  0xc7 LB: >> { %s868_s19 = sshll.u32 %s1061_s18, 4  ;;  %vm424_vm3 = vcmask 1046528   ;;  %s1065_s12 = smov 8   ;;  %vm401_vm4 = vsmask.f32 7424  ;;  %vm516_vm5 = vcmask 1045504   ;;  %s1061_s18 = sphi %s1199_s18, %s381_s18  }
  0xc8   : >> { %s1205_s20 = scalar_lea.vmem [#allocation2], %s868_s19  ;;  %s1066_s24 = smov 4   ;;  %vm432_vm6 = vcmask 31744   ;;  %vm438_vm7 = vcmask 64512   ;;  %vm511_vm8 = vcmask 97280  }
  0xc9   : >> { %s668_s26 = smul.u32 24, %s1061_s18  ;;  %s381_s18 = sadd.s32 1, %s1061_s18  }
  0xca   : >> { %p378_p2 = scmp.ge.s32.totalorder %s381_s18, 12  }
  0xcb   : >> { %s669_s17 = scalar_lea.vmem %s1175_s14, %s668_s26 }
  0xcd   : >> { %v884_v25 = vld [vmem:[%s1205_s20] sm:$0xf0]  ;;  %v387_v26 = vld [vmem:[%s1205_s20 + $0x8] sm:$0xf]  ;;  %v388_v27 = vld [vmem:[%s1205_s20 + $0xc] sm:$0x1] }
  0xce   : >> { %v885_v28 = vld [vmem:[%s1205_s20] sm:$0xe]  ;;  %v1211_v29 = vunpack.c.l.b16 %v387_v26  ;;  %v399_v30 = vunpack.c.l.b16 %v388_v27  ;;  %v851_v32 = vld [vmem:[%s1205_s20 + $0x28] sm:$0xf]  ;;  %v852_v34 = vld [vmem:[%s1205_s20 + $0x2c] sm:$0x1] }
  0xcf   : >> { %v1214_v31 = vld [vmem:[%s1205_s20 + $0x20] sm:$0xff]   ;;  %v886_v33 = vor.u32 %v885_v28, %v884_v25  ;;  %v1218_v35 = vunpack.c.l.b16 %v851_v32  ;;  %v586_v40 = vunpack.c.l.b16 %v852_v34  ;;  %v831_v46 = vld [vmem:[%s1205_s20 + $0x18] sm:$0xf]  ;;  %v832_v47 = vld [vmem:[%s1205_s20 + $0x1c] sm:$0x1] }
  0xd0   : >> { %v589_v36 = vshrl.u32 %v1214_v31, 16  ;;  %v591_v37 = vshll.u32 %v1214_v31, 16  ;;  %v1223_v38 = vld [vmem:[%s1205_s20] sm:$0xff]   ;;  %v1226_v39 = vpack.c.b16 %v399_v30, %v1211_v29  ;;  %v1238_v53 = vld [vmem:[%s1205_s20 + $0x10] sm:$0xff]   ;;  %v1240_v54 = vunpack.c.l.b16 %v831_v46  ;;  %v838_v25 = vld [vmem:[%s1333_s4 + $0x8] sm:$0xf] }
  0xd1   : >> { %v403_v41 = vshrl.u32 %v1223_v38, 16  ;;  %v405_v42 = vshll.u32 %v1223_v38, 16  ;;  %v892_v43 = vld [vmem:[%s1205_s20 + $0x20] sm:$0xf0]  ;;  %v425_v44 = vrot.slane %v886_v33, 1  ;;  %v587_v49 = vpack.c.b16 %v586_v40, %v1218_v35 }
  0xd2   : >> { %v593_v45 = vrot.slane %v591_v37, 1  ;;  %v426_v48 = vrot.slane %v1226_v39, 1  ;;  %v410_v51 = vshll.u32 %v1226_v39, 16  ;;  %v893_v52 = vld [vmem:[%s1205_s20 + $0x20] sm:$0xe]  ;;  %v463_v55 = vunpack.c.l.b16 %v832_v47 }
  0xd3   : >> { %v407_v50 = vrot.slane %v405_v42, 1  ;;  %v596_v58 = vshll.u32 %v587_v49, 16  ;;  %v894_v60 = vor.u32 %v893_v52, %v892_v43  ;;  %v466_v0 = vshrl.u32 %v1238_v53, 16  ;;  %v888_v10 = vld [vmem:[%s1205_s20 + $0x10] sm:$0xf0] }
  0xd4   : >> { %v427_v56 = vsel %vm424_vm3, %v425_v44, %v426_v48  ;;  %v594_v57 = vor.u32 %v593_v45, %v589_v36  ;;  %v464_v61 = vpack.c.b16 %v463_v55, %v1240_v54  ;;  %v412_v63 = vrot.slane %v410_v51, 1  ;;  %v889_v11 = vld [vmem:[%s1205_s20 + $0x10] sm:$0xe]  ;;  %v870_v26 = vld [vmem:[%s1333_s4 + $0x8] sm:$0x30] }
  0xd5   : >> { %428 = vrot.lane.b32.xlu1 %v427_v56, %s1065_s12  ;;  %v408_v59 = vor.u32 %v407_v50, %v403_v41  ;;  %v598_v62 = vrot.slane %v596_v58, 1  ;;  %v468_v1 = vshll.u32 %v1238_v53, 16  ;;  %v610_v7 = vrot.slane %v894_v60, 1  ;;  %v844_v28 = vld [vmem:[%s1333_s4] sm:$0xf] }
  0xd6   : >> { %v473_v2 = vshll.u32 %v464_v61, 16  ;;  %v611_v8 = vrot.slane %v587_v49, 1  ;;  %v600_v13 = vshrl.u32 %v587_v49, 16  ;;  %v477_v14 = vshrl.u32 %v464_v61, 16  ;;  %v869_v30 = vld [vmem:[%s1333_s4] sm:$0x30] }
  0xd7   : >> { %v599_v3 = vsel %vm401_vm4, %v594_v57, %v598_v62  ;;  %v470_v4 = vrot.slane %v468_v1, 1  ;;  %v413_v6 = vsel %vm401_vm4, %v408_v59, %v412_v63  ;;  %v890_v16 = vor.u32 %v889_v11, %v888_v10  ;;  %v858_v33 = vld [vmem:[%s1333_s4 + $0x10] sm:$0xf]  ;;  %v871_v34 = vld [vmem:[%s1333_s4 + $0x10] sm:$0x30] }
  0xd8   : >> { %603 = vrot.lane.b32.xlu0 %v599_v3, %s1066_s24  ;;  %v475_v5 = vrot.slane %v473_v2, 1  ;;  %v612_v15 = vsel %vm424_vm3, %v610_v7, %v611_v8  ;;  %v602_v17 = vor.u32 %v600_v13, %v598_v62  ;;  %v488_v20 = vrot.slane %v464_v61, 1 }
  0xd9   : >> { %v471_v9 = vor.u32 %v470_v4, %v466_v0  ;;  %v487_v19 = vrot.slane %v890_v16, 1  ;;  %v414_v21 = vshrl.u32 %v1226_v39, 16  ;;  %v839_v27 = vor.u32 %v870_v26, %v838_v25 }
  0xda   : >> { %v479_v18 = vor.u32 %v477_v14, %v475_v5  ;;  %v845_v32 = vor.u32 %v869_v30, %v844_v28  ;;  %v859_v37 = vor.u32 %v871_v34, %v858_v33  ;;  %v461_v43 = vpack.c.b16 %v1240_v54, %v1240_v54 }
  0xdb   : >> { %v476_v12 = vsel %vm401_vm4, %v471_v9, %v475_v5  ;;  %v489_v22 = vsel %vm424_vm3, %v487_v19, %v488_v20  ;;  %v416_v23 = vor.u32 %v414_v21, %v412_v63  ;;  %v518_v36 = vsel %vm516_vm5, %v839_v27, 0 }
  0xdc   : >> { %480 = vrot.lane.b32.xlu2 %v476_v12, %s1066_s24  ;;  %901 = vmatpush.bf16.msra.mxu3 %v518_v36  ;;  %v548_v39 = vsel %vm516_vm5, %v845_v32, 0  ;;  %v639_v40 = vsel %vm516_vm5, %v859_v37, 0  ;;  %v663_v7 = vperm.slane %v1197_v24, 0 }
  0xdd   : >> { %417 = vrot.lane.b32.xlu1 %v413_v6, %s1066_s24  ;;  %527 = vmatpush.bf16.msra.mxu0 %v518_v36 }
  0xde   : >> { %557 = vmatpush.bf16.msra.mxu1 %v548_v39  ;;  %648 = vmatpush.bf16.msra.mxu2 %v639_v40 }
  0xe0   : >> { %613 = vrot.lane.b32.xlu0 %v612_v15, %s1065_s12 }
  0xe4   : >> { %482 = vrot.lane.b32.xlu2 %v479_v18, %s1066_s24 }
  0xe5   : >> { %605 = vrot.lane.b32.xlu1 %v602_v17, %s1066_s24 }
  0xe8   : >> { %490 = vrot.lane.b32.xlu0 %v489_v22, %s1065_s12 }
  0xec   : >> { %492 = vrot.lane.b32.xlu2 %v488_v20, %s1065_s12 }
  0xed   : >> { %419 = vrot.lane.b32.xlu1 %v416_v23, %s1066_s24 }
  0xf0   : >> { %615 = vrot.lane.b32.xlu0 %v611_v8, %s1065_s12 }
  0xf4   : >> { %430 = vrot.lane.b32.xlu2 %v426_v48, %s1065_s12 }
 0x136   : >> { %v481_v41 = vpop.permute.xlu2 %480 }
 0x137   : >> { %v495_v57 = vsel %vm432_vm6, %v1238_v53, %v481_v41 }
 0x13e   : >> { %v483_v42 = vpop.permute.xlu2 %482 }
 0x13f   : >> { %v498_v44 = vsel %vm432_vm6, %v461_v43, %v483_v42 }
 0x146   : >> { %v493_v46 = vpop.permute.xlu2 %492 }
 0x147   : >> { %v429_v45 = vpop.permute.xlu1 %428  ;;  %v502_v47 = vsel %vm438_vm7, %v498_v44, %v493_v46 }
 0x148   : >> { %841 = vmatmul.msk.bf16.vlgmr.msra.gmra.mxu3 %vm511_vm8, %v502_v47 }
 0x14a   : >> { %v604_v48 = vpop.permute.xlu0 %603 }
 0x14b   : >> { %v618_v52 = vsel %vm432_vm6, %v1214_v31, %v604_v48  ;;  %v584_v31 = vpack.c.b16 %v1218_v35, %v1218_v35 }
 0x14e   : >> { %v431_v60 = vpop.permute.xlu2 %430 }
 0x14f   : >> { %v418_v49 = vpop.permute.xlu1 %417 }
 0x150   : >> { %v434_v50 = vsel %vm432_vm6, %v1223_v38, %v418_v49  ;;  %v397_v38 = vpack.c.b16 %v1211_v29, %v1211_v29 }
 0x151   : >> { %v440_v51 = vsel %vm438_vm7, %v434_v50, %v429_v45 }
 0x152   : >> { %846 = vmatmul.msk.bf16.vlgmr.msra.gmra.mxu1 %vm511_vm8, %v440_v51  ;;  %v614_v54 = vpop.permute.xlu0 %613 }
 0x153   : >> { %v623_v55 = vsel %vm438_vm7, %v618_v52, %v614_v54 }
 0x154   : >> { %860 = vmatmul.msk.bf16.vlgmr.msra.gmra.mxu2 %vm511_vm8, %v623_v55 }
 0x157   : >> { %v606_v56 = vpop.permute.xlu1 %605 }
 0x158   : >> { %v621_v53 = vsel %vm432_vm6, %v584_v31, %v606_v56 }
 0x15a   : >> { %v491_v58 = vpop.permute.xlu0 %490 }
 0x15b   : >> { %v500_v59 = vsel %vm438_vm7, %v495_v57, %v491_v58 }
 0x15c   : >> { %840 = vmatmul.msk.bf16.vlgmr.msra.gmra.mxu0 %vm511_vm8, %v500_v59 }
 0x15f   : >> { %v420_v61 = vpop.permute.xlu1 %419 }
 0x160   : >> { %v437_v62 = vsel %vm432_vm6, %v397_v38, %v420_v61 }
 0x161   : >> { %v442_v63 = vsel %vm438_vm7, %v437_v62, %v431_v60 }
 0x162   : >> { %847 = vmatmul.msk.bf16.gmra.mxu1 %vm511_vm8, %v442_v63  ;;  %v616_v0 = vpop.permute.xlu0 %615 }
 0x163   : >> { %v625_v29 = vsel %vm438_vm7, %v621_v53, %v616_v0 }
 0x164   : >> { %861 = vmatmul.msk.bf16.gmra.mxu2 %vm511_vm8, %v625_v29 }
 0x1cb   : >> { %v534_v1 = vpop.f32.mrf.mxu3 }
 0x1cf   : >> { %v559_v2 = vpop.f32.mrf.mxu1 }
 0x1d3   : >> { %v536_v3 = vpop.f32.mrf.mxu3 }
 0x1d7   : >> { %v561_v4 = vpop.f32.mrf.mxu1  ;;  %v650_v35 = vpop.f32.mrf.mxu2 }
 0x1d9   : >> { %v529_v5 = vpop.f32.mrf.mxu0 }
 0x1da   : >> { %v560_v6 = vadd.f32 %v559_v2, %v529_v5 }
 0x1dc   : >> { %v659_v8 = vadd.f32 %v650_v35, %v560_v6 }
 0x1de   : >> { %v665_v9 = vadd.f32 %v663_v7, %v659_v8 }
 0x1df   : >> { %v564_v10 = vpop.f32.mrf.mxu1  ;;  %v652_v11 = vpop.f32.mrf.mxu2 }
 0x1e0   : >> { %670 = vst.msk [vmem:[%s669_s17] sm:$0xff] %vm432_vm6, %v665_v9  ;;  %v565_v15 = vadd.f32 %v564_v10, %v534_v1 }
 0x1e1   : >> { %v531_v12 = vpop.f32.mrf.mxu0 }
 0x1e2   : >> { %v562_v13 = vadd.f32 %v561_v4, %v531_v12 }
 0x1e4   : >> { %v660_v14 = vadd.f32 %v652_v11, %v562_v13 }
 0x1e6   : >> { %v666_v16 = vadd.f32 %v663_v7, %v660_v14 }
 0x1e7   : >> { %v566_v17 = vpop.f32.mrf.mxu1  ;;  %v655_v18 = vpop.f32.mrf.mxu2 }
 0x1e8   : >> { %671 = vst.msk [vmem:[%s669_s17 + $0x8] sm:$0xff] %vm432_vm6, %v666_v16  ;;  %v661_v19 = vadd.f32 %v655_v18, %v565_v15 }
 0x1ea   : >> { %v667_v20 = vadd.f32 %v663_v7, %v661_v19 }
 0x1eb   : > { %380 = sbr.rel (!%p378_p2) target bundleno = 199 (0xc7), region = 109 }
 0x1ec   : >> { %672 = vst.msk [vmem:[%s669_s17 + $0x10] sm:$0xff] %vm432_vm6, %v667_v20 }
 0x1ef   : >> { %v657_v21 = vpop.f32.mrf.mxu2 }
 0x1f0 PF: > { %s25_s29 = sadd.s32 1, %s1053_s29   ;;  %s1336_s25 = smov %s1045_s27 }
 0x1f1   : > { %p22_p3 = scmp.ge.s32.totalorder %s25_s29, 6   ;;  %s1337_s26 = smov %s1049_s28 }
 0x1f2   : > { %s1338_s27 = smov %s1341_s30  ;;  %s1339_s28 = smov %s1345_s7 }
 0x1f3   :  { %24 = sbr.rel (!%p22_p3) target bundleno = 9 (0x9), region = 120 }
 0x1f8   :  { %705 = vsyncpa [#allocation6], 1 }
 0x1f9   :  { %707 = vsyncpa [#allocation6 + $0x1], 1 }

</bundles_post_ra>
